<compile_context>
chip_gen: v5e
topology: v5e:2x2
jax: 0.10.0
libtpu: 0.0.40
codegen_flags: <defaults>
</compile_context>

<pallas_src>
import jax
import jax.numpy as jnp
import numpy as np
from jax import lax
from jax.experimental import pallas as pl
from jax.experimental.pallas import tpu as pltpu


def _round_up(x, m):
    return ((x + m - 1) // m) * m


def _sublane(dtype):
    """Native packed sublane tile for a dtype (8 f32 / 16 bf16 / 32 int8)."""
    return {4: 8, 2: 16, 1: 32}.get(np.dtype(dtype).itemsize, 8)


def _largest_tile(d, cap):
    """Largest multiple of 128 that divides d and is <= cap (d % 128 == 0)."""
    cap = min(cap, d)
    k = max(1, cap // 128)
    while k > 1 and d % (k * 128) != 0:
        k -= 1
    return k * 128


def _make_kernel(seq_axis):
    """Kernel over one (n_tile, c) block; sequence on sublanes, features on lanes."""

    def kernel(prev_ref, g_ref, x_ref, o_ref, carry_ref):
        # NOTE: carry chaining across sequence blocks is only correct because
        # the sequence grid axis is the INNERMOST axis and is "arbitrary";
        # every other grid axis may be megacore-sharded ("parallel").
        nb = pl.program_id(seq_axis)

        @pl.when(nb == 0)
        def _init():
            carry_ref[...] = prev_ref[...].astype(jnp.float32)

        n_tile = x_ref.shape[0]
        g = g_ref[...].astype(jnp.float32)   # (n_tile, c) or (n_tile, 1)
        x = x_ref[...].astype(jnp.float32)   # (n_tile, c)

        # ---- Phase 1: 3-step inclusive Hillis-Steele scan inside each
        # 8-sublane group.  Masks are (n_tile, 1) columns (cheap compares)
        # broadcast over lanes; wrapped rows are replaced by the identity
        # element (gate=1, input=0) of the combine.
        sub = lax.broadcasted_iota(jnp.int32, (n_tile, 1), 0) % 8
        for shift in (1, 2, 4):
            valid = sub >= shift
            xp = jnp.where(valid, pltpu.roll(x, shift, axis=0), 0.0)
            gp = jnp.where(valid, pltpu.roll(g, shift, axis=0), 1.0)
            x = x + g * xp
            g = g * gp
        # Row t now holds the scan of its 8-row group up to t (zero carry) and
        # the within-group cumulative gate product.

        # ---- Phase 2+3: short serial carry chain over the n_tile//8 group
        # aggregates, folding in the cross-block carry (and `prev` via nb==0),
        # then one full-width lane-dense store.
        carry = carry_ref[...]               # (1, c) f32
        parts = []
        for gi in range(n_tile // 8):
            r0 = 8 * gi
            blk = x[r0:r0 + 8] + g[r0:r0 + 8] * carry
            parts.append(blk)
            carry = blk[7:8, :]
        carry_ref[...] = carry
        o_ref[...] = jnp.concatenate(parts, axis=0).astype(o_ref.dtype)

    return kernel


def _scan_direct(g, x, p, out_dtype, *, n_tile=None, d_tile=None):
    """Native (b, n, d) layout; requires d % 128 == 0.  No host transposes."""
    b, n, d = x.shape
    gd = g.shape[-1]
    sublane = max(_sublane(x.dtype), _sublane(g.dtype), _sublane(out_dtype))

    if n_tile is None:
        n_tile = 128
    n_tile = _round_up(min(n_tile, _round_up(n, sublane)), sublane)

    cap = d_tile if d_tile is not None else 1024
    if d_tile is None and b == 1 and d >= 256:
        cap = min(cap, d // 2)   # keep >= 2 "parallel" tiles so both v7x TCs work
    d_tile = _largest_tile(d, cap)

    n_pad = _round_up(n, n_tile)
    if n_pad != n:               # conditional: zero HBM cost when n_tile | n
        x = jnp.pad(x, ((0, 0), (0, n_pad - n), (0, 0)))
        g = jnp.pad(g, ((0, 0), (0, n_pad - n), (0, 0)))

    # Sequence axis LAST and "arbitrary" -> required by the carry scratch.
    grid = (b, d // d_tile, n_pad // n_tile)

    if gd == d:
        g_spec = pl.BlockSpec((None, n_tile, d_tile), lambda bi, di, ni: (bi, ni, di))
    else:  # gd == 1: scalar-per-step gates, broadcast across lanes in-kernel
        g_spec = pl.BlockSpec((None, n_tile, 1), lambda bi, di, ni: (bi, ni, 0))

    out = pl.pallas_call(
        _make_kernel(seq_axis=2),
        out_shape=jax.ShapeDtypeStruct((b, n_pad, d), out_dtype),
        grid=grid,
        in_specs=[
            pl.BlockSpec((None, 1, d_tile), lambda bi, di, ni: (bi, 0, di)),        # prev
            g_spec,                                                                 # gates
            pl.BlockSpec((None, n_tile, d_tile), lambda bi, di, ni: (bi, ni, di)),  # inputs
        ],
        out_specs=pl.BlockSpec((None, n_tile, d_tile), lambda bi, di, ni: (bi, ni, di)),
        scratch_shapes=[pltpu.VMEM((1, d_tile), jnp.float32)],                      # carry
        compiler_params=pltpu.CompilerParams(
            dimension_semantics=("parallel", "parallel", "arbitrary")),
    )(p, g, x)

    if n_pad != n:
        out = out[:, :n]
    return out


def _scan_lane_packed(g, x, p, out_dtype, *, n_tile=None, c_tile=None):
    """Small-d path: pack b*d onto lanes (padded to 128), sequence on sublanes."""
    b, n, d = x.shape
    gd = g.shape[-1]
    if gd != d:
        # TODO(synk): broadcast scalar-per-step gates inside the kernel for the
        # lane-packed path too, instead of materialising them here.
        g = jnp.broadcast_to(g, (b, n, d))

    C = b * d
    x2 = jnp.transpose(x, (1, 0, 2)).reshape(n, C)
    g2 = jnp.transpose(g, (1, 0, 2)).reshape(n, C)
    p2 = p.reshape(1, C)  # already f32

    sublane = max(_sublane(x.dtype), _sublane(g.dtype), _sublane(out_dtype))
    if c_tile is None:
        c_tile = min(_round_up(C, 128), 1024)
    c_tile = _round_up(c_tile, 128)
    if n_tile is None:
        n_tile = 128
    n_tile = _round_up(min(n_tile, _round_up(n, sublane)), sublane)

    C_pad = _round_up(C, c_tile)
    n_pad = _round_up(n, n_tile)
    if (n_pad, C_pad) != (n, C):
        x2 = jnp.pad(x2, ((0, n_pad - n), (0, C_pad - C)))
        g2 = jnp.pad(g2, ((0, n_pad - n), (0, C_pad - C)))
    if C_pad != C:
        p2 = jnp.pad(p2, ((0, 0), (0, C_pad - C)))

    grid = (C_pad // c_tile, n_pad // n_tile)   # sequence axis LAST / "arbitrary"

    out2 = pl.pallas_call(
        _make_kernel(seq_axis=1),
        out_shape=jax.ShapeDtypeStruct((n_pad, C_pad), out_dtype),
        grid=grid,
        in_specs=[
            pl.BlockSpec((1, c_tile), lambda ci, ni: (0, ci)),        # prev
            pl.BlockSpec((n_tile, c_tile), lambda ci, ni: (ni, ci)),  # gates
            pl.BlockSpec((n_tile, c_tile), lambda ci, ni: (ni, ci)),  # inputs
        ],
        out_specs=pl.BlockSpec((n_tile, c_tile), lambda ci, ni: (ni, ci)),
        scratch_shapes=[pltpu.VMEM((1, c_tile), jnp.float32)],        # carry
        compiler_params=pltpu.CompilerParams(
            dimension_semantics=("parallel", "arbitrary")),
    )(p2, g2, x2)

    out = out2[:n, :C].reshape(n, b, d).transpose(1, 0, 2)
    return out


def assoc_scan(gates, inputs, prev=None, remove_prev=None, *,
               n_tile=None, d_tile=None):
    """Pallas implementation of AssocScan.forward (inclusive linear scan)."""
    if remove_prev is None:
        remove_prev = prev is not None

    b, n = inputs.shape[0], inputs.shape[1]
    rest = inputs.shape[2:]
    d = int(np.prod(rest)) if rest else 1

    # pack 'b n *' -> 'b n d' (metadata-only reshapes, no HBM traffic)
    x = inputs.reshape(b, n, d)
    gd = int(np.prod(gates.shape[2:])) if gates.ndim > 2 else 1
    g = gates.reshape(b, n, gd)          # keep gates in their original dtype
    if gd not in (1, d):
        g = jnp.broadcast_to(g, (b, n, d))
        gd = d

    out_dtype = jnp.promote_types(g.dtype, x.dtype)

    # `prev` (or zeros) is the initial carry; it is tiny, keep it in f32.
    if prev is not None:
        p = prev.reshape(b, 1, d).astype(jnp.float32)
    else:
        p = jnp.zeros((b, 1, d), jnp.float32)

    if d % 128 == 0:
        out = _scan_direct(g, x, p, out_dtype, n_tile=n_tile, d_tile=d_tile)
    else:
        out = _scan_lane_packed(g, x, p, out_dtype, n_tile=n_tile, c_tile=d_tile)

    if prev is not None and not remove_prev:
        out = jnp.concatenate([p.astype(out.dtype), out], axis=1)
        return out.reshape((b, n + 1) + rest)
    if prev is None and remove_prev:
        return out[:, 1:].reshape((b, n - 1) + rest)
    return out.reshape((b, n) + rest)


# ------------------------------ verification ------------------------------

def _to_np_f64(a):
    return np.asarray(jnp.asarray(a, dtype=jnp.float32), dtype=np.float64)


def _reference(gates, inputs, prev=None, remove_prev=None):
    """Pure NumPy reference of the same recurrence."""
    if remove_prev is None:
        remove_prev = prev is not None
    b, n = inputs.shape[0], inputs.shape[1]
    rest = inputs.shape[2:]
    d = int(np.prod(rest)) if rest else 1
    x = _to_np_f64(inputs).reshape(b, n, d)
    g = np.broadcast_to(_to_np_f64(gates).reshape(b, n, -1), x.shape).copy()
    if prev is not None:
        pv = _to_np_f64(prev).reshape(b, 1, d)
        x = np.concatenate([pv, x], axis=1)
        g = np.concatenate([np.ones((b, 1, d)), g], axis=1)
    out = np.zeros_like(x)
    out[:, 0] = x[:, 0]
    for t in range(1, x.shape[1]):
        out[:, t] = g[:, t] * out[:, t - 1] + x[:, t]
    if remove_prev:
        out = out[:, 1:]
    return out.reshape((b, out.shape[1]) + rest)


if __name__ == "__main__":
    key = jax.random.PRNGKey(0)
    ks = jax.random.split(key, 12)

    # Case 1: small packed feature dim (d = 32 < 128) -> lane-packed path.
    B, N, H, W = 2, 8, 4, 8
    inputs = jax.random.normal(ks[0], (B, N, H, W), dtype=jnp.float32)
    gates = jax.nn.sigmoid(jax.random.normal(ks[1], (B, N, H, W), dtype=jnp.float32))
    prev = jax.random.normal(ks[2], (B, H, W), dtype=jnp.float32)

    out = assoc_scan(gates, inputs)
    jax.block_until_ready(out)
    np.testing.assert_allclose(np.asarray(out), _reference(gates, inputs),
                               rtol=1e-4, atol=1e-4)

    out = assoc_scan(gates, inputs, prev=prev)
    jax.block_until_ready(out)
    np.testing.assert_allclose(np.asarray(out), _reference(gates, inputs, prev=prev),
                               rtol=1e-4, atol=1e-4)

    out = assoc_scan(gates, inputs, prev=prev, remove_prev=False)
    jax.block_until_ready(out)
    np.testing.assert_allclose(
        np.asarray(out), _reference(gates, inputs, prev=prev, remove_prev=False),
        rtol=1e-4, atol=1e-4)

    # Case 2: lane-sized feature dim (d = 128) -> direct (b, n, d) path with
    # multiple sequence blocks (exercises the cross-block carry chain).
    B2, N2, D2 = 2, 32, 128
    inputs2 = jax.random.normal(ks[3], (B2, N2, D2), dtype=jnp.float32)
    gates2 = jax.nn.sigmoid(jax.random.normal(ks[4], (B2, N2, D2), dtype=jnp.float32))
    prev2 = jax.random.normal(ks[5], (B2, D2), dtype=jnp.float32)
    out2 = assoc_scan(gates2, inputs2, prev=prev2, n_tile=8)
    jax.block_until_ready(out2)
    np.testing.assert_allclose(np.asarray(out2),
                               _reference(gates2, inputs2, prev=prev2),
                               rtol=1e-4, atol=1e-4)

    # Case 3: scalar-per-step gates (gate dim == 1), broadcast inside the kernel.
    B3, N3, D3 = 2, 24, 256
    inputs3 = jax.random.normal(ks[6], (B3, N3, D3), dtype=jnp.float32)
    gates3 = jax.nn.sigmoid(jax.random.normal(ks[7], (B3, N3), dtype=jnp.float32))
    out3 = assoc_scan(gates3, inputs3, n_tile=8)
    jax.block_until_ready(out3)
    np.testing.assert_allclose(np.asarray(out3), _reference(gates3, inputs3),
                               rtol=1e-4, atol=1e-4)

    # Case 4: bf16 inputs with f32 gates (gate precision preserved in-kernel).
    B4, N4, D4 = 2, 32, 128
    inputs4 = jax.random.normal(ks[8], (B4, N4, D4), dtype=jnp.bfloat16)
    gates4 = jax.nn.sigmoid(jax.random.normal(ks[9], (B4, N4, D4), dtype=jnp.float32))
    prev4 = jax.random.normal(ks[10], (B4, D4), dtype=jnp.bfloat16)
    out4 = assoc_scan(gates4, inputs4, prev=prev4)
    jax.block_until_ready(out4)
    np.testing.assert_allclose(np.asarray(out4.astype(jnp.float32)),
                               _reference(gates4, inputs4, prev=prev4),
                               rtol=1e-3, atol=1e-3)

    print("KERNEL_OK")
</pallas_src>

<mosaic_0001>
module attributes {stable_mosaic.version = 11 : i64} {
  func.func @kernel(%arg0: i32, %arg1: i32, %arg2: memref<1x128xf32, #tpu.memory_space<vmem>>, %arg3: memref<8x128xf32, #tpu.memory_space<vmem>>, %arg4: memref<8x128xf32, #tpu.memory_space<vmem>>, %arg5: memref<8x128xf32, #tpu.memory_space<vmem>>, %arg6: memref<1x128xf32, #tpu.memory_space<vmem>>) attributes {dimension_semantics = [#tpu.dimension_semantics<parallel>, #tpu.dimension_semantics<arbitrary>], iteration_bounds = array<i64: 1, 1>, scalar_prefetch = 0 : i64, scratch_operands = 1 : i64, tpu.core_type = #tpu.core_type<tc>, window_params = [{transform_indices = @transform_0, window_bounds = array<i64: 1, 128>}, {transform_indices = @transform_1, window_bounds = array<i64: 8, 128>}, {transform_indices = @transform_2, window_bounds = array<i64: 8, 128>}, {transform_indices = @transform_3, window_bounds = array<i64: 8, 128>}]} {
    %c0_i32 = arith.constant 0 : i32
    %0 = arith.cmpi eq, %arg1, %c0_i32 : i32
    %1 = arith.extui %0 : i1 to i32
    %c0_i32_0 = arith.constant 0 : i32
    %2 = arith.cmpi ne, %1, %c0_i32_0 : i32
    scf.if %2 {
      %c0_26 = arith.constant 0 : index
      %c0_27 = arith.constant 0 : index
      %74 = vector.load %arg2[%c0_26, %c0_27] : memref<1x128xf32, #tpu.memory_space<vmem>>, vector<1x128xf32>
      %c0_28 = arith.constant 0 : index
      %c0_29 = arith.constant 0 : index
      %75 = vector.load %arg6[%c0_28, %c0_29] : memref<1x128xf32, #tpu.memory_space<vmem>>, vector<1x128xf32>
      tpu.vector_store %arg6[%c0_28, %c0_29], %74 {strides = array<i32>} : memref<1x128xf32, #tpu.memory_space<vmem>>, vector<1x128xf32>,
    } else {
    }
    %c0 = arith.constant 0 : index
    %c0_1 = arith.constant 0 : index
    %3 = vector.load %arg3[%c0, %c0_1] : memref<8x128xf32, #tpu.memory_space<vmem>>, vector<8x128xf32>
    %c0_2 = arith.constant 0 : index
    %c0_3 = arith.constant 0 : index
    %4 = vector.load %arg4[%c0_2, %c0_3] : memref<8x128xf32, #tpu.memory_space<vmem>>, vector<8x128xf32>
    %5 = tpu.iota {dimensions = array<i32: 0>} : vector<8x1xi32>
    %c8_i32 = arith.constant 8 : i32
    %c0_i32_4 = arith.constant 0 : i32
    %6 = arith.cmpi eq, %c8_i32, %c0_i32_4 : i32
    %c1_i32 = arith.constant 1 : i32
    %7 = arith.select %6, %c1_i32, %c8_i32 : i32
    %8 = vector.broadcast %7 : i32 to vector<8x1xi32>
    %9 = arith.remsi %5, %8 : vector<8x1xi32>
    %c0_i32_5 = arith.constant 0 : i32
    %10 = vector.broadcast %c0_i32_5 : i32 to vector<8x1xi32>
    %11 = arith.cmpi ne, %9, %10 : vector<8x1xi32>
    %c0_i32_6 = arith.constant 0 : i32
    %12 = vector.broadcast %c0_i32_6 : i32 to vector<8x1xi32>
    %13 = arith.cmpi slt, %9, %12 : vector<8x1xi32>
    %c0_i32_7 = arith.constant 0 : i32
    %14 = arith.cmpi slt, %7, %c0_i32_7 : i32
    %15 = vector.broadcast %14 : i1 to vector<8x1xi1>
    %16 = vector.broadcast %15 : vector<8x1xi1> to vector<8x1xi1>
    %17 = arith.xori %13, %16 : vector<8x1xi1>
    %18 = arith.andi %17, %11 : vector<8x1xi1>
    %19 = vector.broadcast %7 : i32 to vector<8x1xi32>
    %20 = arith.addi %9, %19 : vector<8x1xi32>
    %21 = arith.select %18, %20, %9 : vector<8x1xi1>, vector<8x1xi32>
    %c1_i32_8 = arith.constant 1 : i32
    %22 = vector.broadcast %c1_i32_8 : i32 to vector<8x1xi32>
    %23 = arith.cmpi sge, %21, %22 : vector<8x1xi32>
    %c1_i32_9 = arith.constant 1 : i32
    %24 = tpu.dynamic_rotate %4 by %c1_i32_9 dim 0 : vector<8x128xf32>, i32 -> vector<8x128xf32>
    %cst = arith.constant 0.000000e+00 : f32
    %25 = vector.shape_cast %23 : vector<8x1xi1> to vector<8x1xi1>
    %26 = vector.broadcast %25 : vector<8x1xi1> to vector<8x128xi1>
    %27 = vector.broadcast %cst : f32 to vector<8x128xf32>
    %28 = arith.select %26, %24, %27 : vector<8x128xi1>, vector<8x128xf32>
    %c1_i32_10 = arith.constant 1 : i32
    %29 = tpu.dynamic_rotate %3 by %c1_i32_10 dim 0 : vector<8x128xf32>, i32 -> vector<8x128xf32>
    %cst_11 = arith.constant 1.000000e+00 : f32
    %30 = vector.shape_cast %23 : vector<8x1xi1> to vector<8x1xi1>
    %31 = vector.broadcast %30 : vector<8x1xi1> to vector<8x128xi1>
    %32 = vector.broadcast %cst_11 : f32 to vector<8x128xf32>
    %33 = arith.select %31, %29, %32 : vector<8x128xi1>, vector<8x128xf32>
    %34 = arith.mulf %3, %28 : vector<8x128xf32>
    %35 = arith.addf %4, %34 : vector<8x128xf32>
    %36 = arith.mulf %3, %33 : vector<8x128xf32>
    %c2_i32 = arith.constant 2 : i32
    %37 = vector.broadcast %c2_i32 : i32 to vector<8x1xi32>
    %38 = arith.cmpi sge, %21, %37 : vector<8x1xi32>
    %c2_i32_12 = arith.constant 2 : i32
    %39 = tpu.dynamic_rotate %35 by %c2_i32_12 dim 0 : vector<8x128xf32>, i32 -> vector<8x128xf32>
    %cst_13 = arith.constant 0.000000e+00 : f32
    %40 = vector.shape_cast %38 : vector<8x1xi1> to vector<8x1xi1>
    %41 = vector.broadcast %40 : vector<8x1xi1> to vector<8x128xi1>
    %42 = vector.broadcast %cst_13 : f32 to vector<8x128xf32>
    %43 = arith.select %41, %39, %42 : vector<8x128xi1>, vector<8x128xf32>
    %c2_i32_14 = arith.constant 2 : i32
    %44 = tpu.dynamic_rotate %36 by %c2_i32_14 dim 0 : vector<8x128xf32>, i32 -> vector<8x128xf32>
    %cst_15 = arith.constant 1.000000e+00 : f32
    %45 = vector.shape_cast %38 : vector<8x1xi1> to vector<8x1xi1>
    %46 = vector.broadcast %45 : vector<8x1xi1> to vector<8x128xi1>
    %47 = vector.broadcast %cst_15 : f32 to vector<8x128xf32>
    %48 = arith.select %46, %44, %47 : vector<8x128xi1>, vector<8x128xf32>
    %49 = arith.mulf %36, %43 : vector<8x128xf32>
    %50 = arith.addf %35, %49 : vector<8x128xf32>
    %51 = arith.mulf %36, %48 : vector<8x128xf32>
    %c4_i32 = arith.constant 4 : i32
    %52 = vector.broadcast %c4_i32 : i32 to vector<8x1xi32>
    %53 = arith.cmpi sge, %21, %52 : vector<8x1xi32>
    %c4_i32_16 = arith.constant 4 : i32
    %54 = tpu.dynamic_rotate %50 by %c4_i32_16 dim 0 : vector<8x128xf32>, i32 -> vector<8x128xf32>
    %cst_17 = arith.constant 0.000000e+00 : f32
    %55 = vector.shape_cast %53 : vector<8x1xi1> to vector<8x1xi1>
    %56 = vector.broadcast %55 : vector<8x1xi1> to vector<8x128xi1>
    %57 = vector.broadcast %cst_17 : f32 to vector<8x128xf32>
    %58 = arith.select %56, %54, %57 : vector<8x128xi1>, vector<8x128xf32>
    %c4_i32_18 = arith.constant 4 : i32
    %59 = tpu.dynamic_rotate %51 by %c4_i32_18 dim 0 : vector<8x128xf32>, i32 -> vector<8x128xf32>
    %cst_19 = arith.constant 1.000000e+00 : f32
    %60 = vector.shape_cast %53 : vector<8x1xi1> to vector<8x1xi1>
    %61 = vector.broadcast %60 : vector<8x1xi1> to vector<8x128xi1>
    %62 = vector.broadcast %cst_19 : f32 to vector<8x128xf32>
    %63 = arith.select %61, %59, %62 : vector<8x128xi1>, vector<8x128xf32>
    %64 = arith.mulf %51, %58 : vector<8x128xf32>
    %65 = arith.addf %50, %64 : vector<8x128xf32>
    %66 = arith.mulf %51, %63 : vector<8x128xf32>
    %c0_20 = arith.constant 0 : index
    %c0_21 = arith.constant 0 : index
    %67 = vector.load %arg6[%c0_20, %c0_21] : memref<1x128xf32, #tpu.memory_space<vmem>>, vector<1x128xf32>
    %68 = vector.broadcast %67 : vector<1x128xf32> to vector<8x128xf32>
    %69 = arith.mulf %66, %68 : vector<8x128xf32>
    %70 = arith.addf %65, %69 : vector<8x128xf32>
    %71 = vector.extract_strided_slice %70 {offsets = [7, 0], sizes = [1, 128], strides = [1, 1]} : vector<8x128xf32> to vector<1x128xf32>
    %c0_22 = arith.constant 0 : index
    %c0_23 = arith.constant 0 : index
    %72 = vector.load %arg6[%c0_22, %c0_23] : memref<1x128xf32, #tpu.memory_space<vmem>>, vector<1x128xf32>
    tpu.vector_store %arg6[%c0_22, %c0_23], %71 {strides = array<i32>} : memref<1x128xf32, #tpu.memory_space<vmem>>, vector<1x128xf32>,
    %c0_24 = arith.constant 0 : index
    %c0_25 = arith.constant 0 : index
    %73 = vector.load %arg5[%c0_24, %c0_25] : memref<8x128xf32, #tpu.memory_space<vmem>>, vector<8x128xf32>
    tpu.vector_store %arg5[%c0_24, %c0_25], %70 {strides = array<i32>} : memref<8x128xf32, #tpu.memory_space<vmem>>, vector<8x128xf32>,
    return
  }
  func.func @transform_0(%arg0: i32, %arg1: i32) -> (i32, i32) {
    %c0_i32 = arith.constant 0 : i32
    %c0_i32_0 = arith.constant 0 : i32
    return %c0_i32, %arg0 : i32, i32
  }
  func.func @transform_1(%arg0: i32, %arg1: i32) -> (i32, i32) {
    %c0_i32 = arith.constant 0 : i32
    return %arg1, %arg0 : i32, i32
  }
  func.func @transform_2(%arg0: i32, %arg1: i32) -> (i32, i32) {
    %c0_i32 = arith.constant 0 : i32
    return %arg1, %arg0 : i32, i32
  }
  func.func @transform_3(%arg0: i32, %arg1: i32) -> (i32, i32) {
    %c0_i32 = arith.constant 0 : i32
    return %arg1, %arg0 : i32, i32
  }
}

</mosaic_0001>

<bundles_post_ra>
// kernel: tpu_custom_call.1
= control target key start
LH: loop header
LB: loop body
LE: loop exit
PB: predicated region body
PF: predicated region fallthrough
CT: control target
= control target key end

     0   :  { %8 = vsyncpa [#allocation4], 0  ;;  %s277_s0 = inlined_call_operand.hbm [shape: f32[1,128], index: 0, kind: input, shape index: {}]   ;;  %s278_s1 = inlined_call_operand.hbm [shape: f32[8,128], index: 1, kind: input, shape index: {}]   ;;  %s279_s2 = inlined_call_operand.hbm [shape: f32[8,128], index: 2, kind: input, shape index: {}]   ;;  %s280_s3 = inlined_call_operand.hbm [shape: f32[8,128], index: 3, kind: output, shape index: {}]  }
   0x1   :  { %9 = vsyncpa [#allocation7], 0  ;;  %s27_s14 = sshll.u32 %s278_s1, 4  ;;  %s28_s14 = int_to_ptr.hbm [resolvable:$true] %s27_s14 }
   0x2   :  { %10 = vsyncpa [#allocation5], 0  ;;  %s241_s15 = smov [#allocation6]   ;;  %s16_s19 = sshll.u32 %s277_s0, 4  ;;  %s17_s19 = int_to_ptr.hbm [resolvable:$true] %s16_s19 }
   0x3   :  { %s29_s16 = sshll.u32 %s241_s15, 4  ;;  %s242_s20 = smov [#allocation3]   ;;  %s30_s16 = int_to_ptr.vmem [resolvable:$true] %s29_s16 }
   0x4   :  { %32 = dma.hbm_to_vmem [thread:$0]  %s28_s14, 128, %s30_s16, [#allocation7]  }
   0x5   :  { %s18_s21 = sshll.u32 %s242_s20, 4  ;;  %s38_s24 = sshll.u32 %s279_s2, 4  ;;  %s19_s21 = int_to_ptr.vmem [resolvable:$true] %s18_s21  ;;  %s39_s24 = int_to_ptr.hbm [resolvable:$true] %s38_s24 }
   0x6   :  { %21 = dma.hbm_to_vmem [thread:$0]  %s17_s19, 16, %s19_s21, [#allocation4]  }
   0x7   :  { %s243_s1 = smov [#allocation8]  }
   0x8   :  { %s40_s25 = sshll.u32 %s243_s1, 4  ;;  %s41_s25 = int_to_ptr.vmem [resolvable:$true] %s40_s25 }
   0x9   :  { %43 = dma.hbm_to_vmem [thread:$0]  %s39_s24, 128, %s41_s25, [#allocation7]  }
   0xa   :  { %235 = dma.done.wait [#allocation4], 16  }
   0xb   :  { %236 = vsyncadd [#allocation4], 4294967280 }
   0xc   :  { %237 = dma.done.wait [#allocation7], 256  }
   0xd   :  { %238 = vsyncadd [#allocation7], 4294967040  ;;  %v64_v0 = vlaneseq  ;;  %v60_v3 = vld [vmem:[#allocation3] sm:$0x1]  ;;  %v62_v4 = vld [vmem:[#allocation6] sm:$0xff]  ;;  %s244_s0 = smov [#allocation9]  }
   0xe   :  { %v63_v5 = vld [vmem:[#allocation8] sm:$0xff]  ;;  %61 = vst [vmem:[#allocation2] sm:$0x1] %v60_v3  ;;  %v83_v7 = vrot.slane %v62_v4, 7  ;;  %s121_s2 = sshll.u32 %s244_s0, 4  ;;  %s123_s28 = sshll.u32 %s280_s3, 4  ;;  %s122_s2 = int_to_ptr.vmem [resolvable:$true] %s121_s2  ;;  %s124_s28 = int_to_ptr.hbm [resolvable:$true] %s123_s28 }
   0xf   :  { %v65_v1 = vshrl.u32 %v64_v0, 7  ;;  %v79_v6 = vrot.slane %v63_v5, 7 }
  0x11   :  { %v70_v2 = vand.u32 7, %v65_v1 }
  0x13   :  { %vm78_vm0 = vcmp.ge.s32.totalorder %v70_v2, 1  ;;  %vm88_vm1 = vcmp.ge.s32.totalorder %v70_v2, 2  ;;  %vm98_vm2 = vcmp.ge.s32.totalorder %v70_v2, 4 }
  0x14   :  { %v82_v8 = vsel %vm78_vm0, %v79_v6, 0.0  ;;  %v84_v9 = vsel %vm78_vm0, %v83_v7, 1.0 }
  0x15   :  { %v85_v10 = vmul.f32 %v82_v8, %v62_v4  ;;  %v87_v11 = vmul.f32 %v84_v9, %v62_v4  ;;  %v138_v23 = vld [vmem:[#allocation2] ss:$0 sm:$0xff] }
  0x17   :  { %v86_v12 = vadd.f32 %v85_v10, %v63_v5  ;;  %v93_v13 = vrot.slane %v87_v11, 6 }
  0x19   :  { %v89_v14 = vrot.slane %v86_v12, 6  ;;  %v94_v15 = vsel %vm88_vm1, %v93_v13, 1.0 }
  0x1a   :  { %v97_v16 = vmul.f32 %v94_v15, %v87_v11 }
  0x1b   :  { %v92_v17 = vsel %vm88_vm1, %v89_v14, 0.0 }
  0x1c   :  { %v95_v18 = vmul.f32 %v92_v17, %v87_v11  ;;  %v103_v19 = vrot.slane %v97_v16, 4 }
  0x1e   :  { %v96_v20 = vadd.f32 %v95_v18, %v86_v12  ;;  %v104_v21 = vsel %vm98_vm2, %v103_v19, 1.0 }
  0x1f   :  { %v107_v22 = vmul.f32 %v104_v21, %v97_v16 }
  0x20   :  { %v99_v24 = vrot.slane %v96_v20, 4 }
  0x21   :  { %v112_v27 = vmul.f32 %v138_v23, %v107_v22 }
  0x22   :  { %v102_v25 = vsel %vm98_vm2, %v99_v24, 0.0 }
  0x23   :  { %v105_v26 = vmul.f32 %v102_v25, %v97_v16 }
  0x25   :  { %v106_v28 = vadd.f32 %v105_v26, %v96_v20 }
  0x27   :  { %v113_v29 = vadd.f32 %v112_v27, %v106_v28 }
  0x29   :  { %114 = vst [vmem:[#allocation2 - $0x7] sm:$0x80] %v113_v29 }
  0x2a   :  { %115 = vst [vmem:[#allocation9] sm:$0xff] %v113_v29 }
  0x2b   :  { %126 = dma.vmem_to_hbm [thread:$0]  %s122_s2, 128, %s124_s28, [#allocation5]  }
  0x2c   :  { %239 = dma.done.wait [#allocation5], 128  }
  0x2d   :  { %240 = vsyncadd [#allocation5], 4294967168 }
  0x2e   :  { %131 = vsyncpa [#allocation4], 1 }
  0x2f   :  { %132 = vsyncpa [#allocation7], 1 }
  0x30   :  { %133 = vsyncpa [#allocation5], 1 }

</bundles_post_ra>
